<compile_context>
chip_gen: v5e
topology: v5e:2x2
jax: 0.10.0
libtpu: 0.0.40
codegen_flags: <defaults>
</compile_context>

<pallas_src>
import functools

import jax
import jax.numpy as jnp
from jax.experimental import pallas as pl
from jax.experimental.pallas import tpu as pltpu

EPS = 1e-5


def _vmem_capacity_bytes():
    """Physical VMEM per core; conservative fallback if the query is unavailable."""
    try:
        return int(pltpu.get_tpu_info().vmem_capacity_bytes)
    except Exception:
        return 64 * 1024 * 1024   # v7x floor; safe (just smaller tiles) elsewhere


def _plan_tiles(N, c_tile, HW, itemsize, vmem_limit, max_hw_tile=None):
    """Pick a lane-aligned HW tile that fits the per-step VMEM budget.

    Per-step VMEM of pass 2 (the binding pass) ~ double-buffered x block + y block
    plus f32 elementwise temporaries ~ N*c_tile*tile*(4*itemsize + 16) bytes.
    Returns (hw_tile, hw_pad) with hw_tile % 128 == 0 and hw_pad % hw_tile == 0.
    """
    budget = vmem_limit // 2
    per_lane = N * c_tile * (4 * itemsize + 16)
    tile_cap = max(128, (budget // per_lane) // 128 * 128)
    if max_hw_tile is not None:
        tile_cap = min(tile_cap, max(128, (max_hw_tile // 128) * 128))

    hw128 = ((HW + 127) // 128) * 128
    hw_tile = min(tile_cap, hw128)
    if HW % 128 == 0:
        while HW % hw_tile != 0:        # largest 128-multiple tile dividing HW
            hw_tile -= 128
        hw_pad = HW
    else:
        hw_pad = ((HW + hw_tile - 1) // hw_tile) * hw_tile
    return hw_tile, hw_pad


def _stats_kernel(hw_total, x_ref, mt_ref, ms_ref,
                  g0_ref, b0_ref, g1_ref, b1_ref,
                  sc0_ref, bi0_ref, sc1_ref, bi1_ref,
                  sum_s, sq_s):
    """Pass 1: accumulate per-(n, c) sum / sum(x^2) over HW tiles; on the last
    tile fold the domain masks + affine params into per-domain (1, C) scale/bias.

    x_ref          : (N, c_tile, hw_tile) in x's dtype, HW on lanes
    mt_ref, ms_ref : (N, 1) f32 domain masks (1.0 where selected)
    g*_ref, b*_ref : (1, c_tile) f32 affine params of the two BN instances
    sc*_ref, bi*_ref : (1, c_tile) f32 per-domain outputs (y = x*sc + bi)
    sum_s, sq_s    : (N, c_tile) f32 VMEM accumulators (lane-dense)
    """
    t = pl.program_id(1)
    nt = pl.num_programs(1)

    @pl.when(t == 0)
    def _init():
        sum_s[...] = jnp.zeros_like(sum_s)
        sq_s[...] = jnp.zeros_like(sq_s)

    x = x_ref[...].astype(jnp.float32)          # cast in-vreg; HBM stays narrow
    sum_s[...] += jnp.sum(x, axis=2)            # lane (XLU) reduction -> (N, c_tile)
    sq_s[...] += jnp.sum(x * x, axis=2)

    @pl.when(t == nt - 1)
    def _finalize():
        s = sum_s[...]                          # (N, c_tile)
        q = sq_s[...]

        def domain(mask, g_ref, b_ref, sc_ref, bi_ref):
            cnt = jnp.maximum(jnp.sum(mask, keepdims=True) * hw_total, 1.0)   # (1, 1)
            mean = jnp.sum(s * mask, axis=0, keepdims=True) / cnt             # (1, c_tile)
            ex2 = jnp.sum(q * mask, axis=0, keepdims=True) / cnt
            # TODO(synk): E[x^2]-mean^2 loses precision for very large activation
            # means; a shifted / Welford reduction is more robust if needed.
            var = jnp.maximum(ex2 - mean * mean, 0.0)                          # biased var
            inv = jax.lax.rsqrt(var + EPS)
            sc = inv * g_ref[...]                                              # (1, c_tile)
            sc_ref[...] = sc
            bi_ref[...] = b_ref[...] - mean * sc

        domain(mt_ref[...], g0_ref, b0_ref, sc0_ref, bi0_ref)
        domain(ms_ref[...], g1_ref, b1_ref, sc1_ref, bi1_ref)
        # Empty-domain stats are garbage (rsqrt(eps)) but get masked out in pass 2.


def _normalize_kernel(x_ref, mt_ref, ms_ref,
                      sc0_ref, bi0_ref, sc1_ref, bi1_ref, o_ref):
    """Pass 2: one streaming pass, y = is_swi ? x*sc1+bi1 : (is_tof ? x*sc0+bi0 : 0),
    written directly in x's dtype. All broadcasts come from size-1 dims already
    present in the operand shapes (no in-kernel relayouts)."""
    x = x_ref[...].astype(jnp.float32)          # (N, c_tile, hw_tile)
    y1 = x * sc1_ref[...] + bi1_ref[...]        # (1, c_tile, 1) broadcast along lanes
    y0 = x * sc0_ref[...] + bi0_ref[...]
    y = jnp.where(ms_ref[...] > 0.0, y1,        # (N, 1, 1) per-sample domain select
                  jnp.where(mt_ref[...] > 0.0, y0, 0.0))
    o_ref[...] = y.astype(o_ref.dtype)


def my_batchnorm2d_forward(x_nchw, is_tof, is_swi,
                           gamma0, beta0, gamma1, beta1,
                           max_hw_tile=None):
    """x_nchw: (N, C, H, W) float dtype; is_tof/is_swi: (N,) bool; params: (C,)."""
    N, C, H, W = x_nchw.shape
    HW = H * W
    out_dtype = x_nchw.dtype
    itemsize = jnp.dtype(out_dtype).itemsize

    # Channel-block 'parallel' axis lets both passes shard across the two
    # TensorCores on v7x without any cross-core reduction. Needs c_tile % 128 == 0
    # so the (1, C) param / output blocks stay lane-legal per block.
    n_cb = 2 if (C % 256 == 0) else 1
    c_tile = C // n_cb

    vmem_cap = _vmem_capacity_bytes()
    vmem_limit = int(vmem_cap * 0.85)
    hw_tile, hw_pad = _plan_tiles(N, c_tile, HW, itemsize, vmem_limit, max_hw_tile)
    nt = hw_pad // hw_tile

    # Keep x in its original dtype (no full-tensor f32 copy); HW stays on lanes.
    x = x_nchw.reshape(N, C, HW)
    if hw_pad != HW:
        # Lane-pad so tiles stay 128-aligned and pipelined; padded zeros add 0 to
        # the sums and hw_total below uses the true HW, so stats remain exact.
        x = jnp.pad(x, ((0, 0), (0, 0), (0, hw_pad - HW)))

    mt2 = is_tof.astype(jnp.float32).reshape(N, 1)
    ms2 = is_swi.astype(jnp.float32).reshape(N, 1)
    g0 = gamma0.astype(jnp.float32).reshape(1, C)
    b0 = beta0.astype(jnp.float32).reshape(1, C)
    g1 = gamma1.astype(jnp.float32).reshape(1, C)
    b1 = beta1.astype(jnp.float32).reshape(1, C)

    vec = lambda c, t: (0, c)       # (1, c_tile) per-channel blocks
    row = lambda c, t: (0, 0)       # (N, 1) per-sample blocks

    # ---- pass 1: tiled stats accumulation + per-domain scale/bias -------------
    sc0, bi0, sc1, bi1 = pl.pallas_call(
        functools.partial(_stats_kernel, float(HW)),
        out_shape=tuple(jax.ShapeDtypeStruct((1, C), jnp.float32) for _ in range(4)),
        grid_spec=pltpu.PrefetchScalarGridSpec(
            num_scalar_prefetch=0,
            grid=(n_cb, nt),
            in_specs=[
                pl.BlockSpec((N, c_tile, hw_tile), lambda c, t: (0, c, t)),
                pl.BlockSpec((N, 1), row),
                pl.BlockSpec((N, 1), row),
                pl.BlockSpec((1, c_tile), vec),
                pl.BlockSpec((1, c_tile), vec),
                pl.BlockSpec((1, c_tile), vec),
                pl.BlockSpec((1, c_tile), vec),
            ],
            out_specs=tuple(pl.BlockSpec((1, c_tile), vec) for _ in range(4)),
            scratch_shapes=[pltpu.VMEM((N, c_tile), jnp.float32),
                            pltpu.VMEM((N, c_tile), jnp.float32)],
        ),
        compiler_params=pltpu.CompilerParams(
            dimension_semantics=("parallel", "arbitrary"),
            vmem_limit_bytes=vmem_limit),
    )(x, mt2, ms2, g0, b0, g1, b1)

    # Tiny (1, C) -> (1, C, 1) expands so pass 2 broadcasts channel vectors along
    # lanes without any in-kernel rank-changing relayout. Per-(n, c) scale maps are
    # deliberately NOT materialized: an (N, C, 1) VMEM block lane-pads 128x.
    sc0_3, bi0_3 = sc0.reshape(1, C, 1), bi0.reshape(1, C, 1)
    sc1_3, bi1_3 = sc1.reshape(1, C, 1), bi1.reshape(1, C, 1)
    mt3 = mt2.reshape(N, 1, 1)
    ms3 = ms2.reshape(N, 1, 1)

    cvec = lambda c, t: (0, c, 0)
    srow = lambda c, t: (0, 0, 0)

    # ---- pass 2: tiled, pipelined, fused normalize + domain select ------------
    y = pl.pallas_call(
        _normalize_kernel,
        out_shape=jax.ShapeDtypeStruct((N, C, hw_pad), out_dtype),
        grid_spec=pltpu.PrefetchScalarGridSpec(
            num_scalar_prefetch=0,
            grid=(n_cb, nt),
            in_specs=[
                pl.BlockSpec((N, c_tile, hw_tile), lambda c, t: (0, c, t)),
                pl.BlockSpec((N, 1, 1), srow),
                pl.BlockSpec((N, 1, 1), srow),
                pl.BlockSpec((1, c_tile, 1), cvec),
                pl.BlockSpec((1, c_tile, 1), cvec),
                pl.BlockSpec((1, c_tile, 1), cvec),
                pl.BlockSpec((1, c_tile, 1), cvec),
            ],
            out_specs=pl.BlockSpec((N, c_tile, hw_tile), lambda c, t: (0, c, t)),
        ),
        compiler_params=pltpu.CompilerParams(
            dimension_semantics=("parallel", "parallel"),
            vmem_limit_bytes=vmem_limit),
    )(x, mt3, ms3, sc0_3, bi0_3, sc1_3, bi1_3)

    if hw_pad != HW:
        y = y[:, :, :HW]
    return y.reshape(N, C, H, W)


def _reference(x, is_tof, is_swi, g0, b0, g1, b1):
    """Pure-JAX reference of the same semantics."""
    N, C, H, W = x.shape

    def bn(mask):
        m = mask.astype(jnp.float32)[:, None, None, None]
        cnt = jnp.maximum(jnp.sum(m) * H * W, 1.0)
        mean = jnp.sum(x * m, axis=(0, 2, 3), keepdims=True) / cnt
        var = jnp.sum(((x - mean) ** 2) * m, axis=(0, 2, 3), keepdims=True) / cnt
        return (x - mean) / jnp.sqrt(var + EPS)

    y0 = bn(is_tof) * g0[None, :, None, None] + b0[None, :, None, None]
    y1 = bn(is_swi) * g1[None, :, None, None] + b1[None, :, None, None]
    mt = is_tof[:, None, None, None]
    ms = is_swi[:, None, None, None]
    return jnp.where(ms, y1, jnp.where(mt, y0, jnp.zeros_like(x)))


if __name__ == "__main__":
    key = jax.random.PRNGKey(0)
    N, C, H, W = 4, 4, 16, 16

    x = jax.random.normal(key, (N, C, H, W), dtype=jnp.float32)
    is_tof = jnp.array([True, False, True, False])
    is_swi = jnp.array([False, True, False, False])   # sample 3: neither domain -> zeros

    # reset_parameters gives gamma=1, beta=0; use non-trivial deterministic
    # values so the affine path is exercised.
    gamma0 = 1.0 + 0.1 * jnp.arange(C, dtype=jnp.float32)
    beta0 = 0.05 * jnp.arange(C, dtype=jnp.float32)
    gamma1 = 1.0 - 0.05 * jnp.arange(C, dtype=jnp.float32)
    beta1 = -0.02 * jnp.arange(C, dtype=jnp.float32)

    # max_hw_tile=128 -> HW=256 splits into 2 tiles, exercising the tiled
    # accumulation + pipelined normalize path.
    out = my_batchnorm2d_forward(x, is_tof, is_swi,
                                 gamma0, beta0, gamma1, beta1,
                                 max_hw_tile=128)
    out = jax.block_until_ready(out)

    ref = _reference(x, is_tof, is_swi, gamma0, beta0, gamma1, beta1)
    assert out.shape == (N, C, H, W)
    assert out.dtype == x.dtype
    assert jnp.allclose(out, ref, atol=1e-4, rtol=1e-4), \
        float(jnp.max(jnp.abs(out - ref)))

    print("KERNEL_OK")
</pallas_src>

<mosaic_0001>
module attributes {stable_mosaic.version = 11 : i64} {
  func.func @_stats_kernel(%arg0: i32, %arg1: i32, %arg2: memref<4x4x128xf32, #tpu.memory_space<vmem>>, %arg3: memref<4x1xf32, #tpu.memory_space<vmem>>, %arg4: memref<4x1xf32, #tpu.memory_space<vmem>>, %arg5: memref<1x4xf32, #tpu.memory_space<vmem>>, %arg6: memref<1x4xf32, #tpu.memory_space<vmem>>, %arg7: memref<1x4xf32, #tpu.memory_space<vmem>>, %arg8: memref<1x4xf32, #tpu.memory_space<vmem>>, %arg9: memref<1x4xf32, #tpu.memory_space<vmem>>, %arg10: memref<1x4xf32, #tpu.memory_space<vmem>>, %arg11: memref<1x4xf32, #tpu.memory_space<vmem>>, %arg12: memref<1x4xf32, #tpu.memory_space<vmem>>, %arg13: memref<4x4xf32, #tpu.memory_space<vmem>>, %arg14: memref<4x4xf32, #tpu.memory_space<vmem>>) attributes {dimension_semantics = [#tpu.dimension_semantics<parallel>, #tpu.dimension_semantics<arbitrary>], iteration_bounds = array<i64: 1, 2>, scalar_prefetch = 0 : i64, scratch_operands = 2 : i64, tpu.core_type = #tpu.core_type<tc>, window_params = [{transform_indices = @transform_0, window_bounds = array<i64: 4, 4, 128>}, {pipeline_mode = #tpu.pipeline_mode<synchronous>, transform_indices = @transform_1, window_bounds = array<i64: 4, 1>}, {pipeline_mode = #tpu.pipeline_mode<synchronous>, transform_indices = @transform_2, window_bounds = array<i64: 4, 1>}, {transform_indices = @transform_3, window_bounds = array<i64: 1, 4>}, {transform_indices = @transform_4, window_bounds = array<i64: 1, 4>}, {transform_indices = @transform_5, window_bounds = array<i64: 1, 4>}, {transform_indices = @transform_6, window_bounds = array<i64: 1, 4>}, {transform_indices = @transform_7, window_bounds = array<i64: 1, 4>}, {transform_indices = @transform_8, window_bounds = array<i64: 1, 4>}, {transform_indices = @transform_9, window_bounds = array<i64: 1, 4>}, {transform_indices = @transform_10, window_bounds = array<i64: 1, 4>}]} {
    %c0_i32 = arith.constant 0 : i32
    %0 = arith.cmpi eq, %arg1, %c0_i32 : i32
    %1 = arith.extui %0 : i1 to i32
    %c0_i32_0 = arith.constant 0 : i32
    %2 = arith.cmpi ne, %1, %c0_i32_0 : i32
    scf.if %2 {
      %cst_13 = arith.constant 0.000000e+00 : f32
      %16 = vector.broadcast %cst_13 : f32 to vector<4x4xf32>
      %c0_14 = arith.constant 0 : index
      %c0_15 = arith.constant 0 : index
      %17 = vector.load %arg13[%c0_14, %c0_15] : memref<4x4xf32, #tpu.memory_space<vmem>>, vector<4x4xf32>
      tpu.vector_store %arg13[%c0_14, %c0_15], %16 {strides = array<i32>} : memref<4x4xf32, #tpu.memory_space<vmem>>, vector<4x4xf32>,
      %cst_16 = arith.constant 0.000000e+00 : f32
      %18 = vector.broadcast %cst_16 : f32 to vector<4x4xf32>
      %c0_17 = arith.constant 0 : index
      %c0_18 = arith.constant 0 : index
      %19 = vector.load %arg14[%c0_17, %c0_18] : memref<4x4xf32, #tpu.memory_space<vmem>>, vector<4x4xf32>
      tpu.vector_store %arg14[%c0_17, %c0_18], %18 {strides = array<i32>} : memref<4x4xf32, #tpu.memory_space<vmem>>, vector<4x4xf32>,
    } else {
    }
    %c0 = arith.constant 0 : index
    %c0_1 = arith.constant 0 : index
    %c0_2 = arith.constant 0 : index
    %3 = vector.load %arg2[%c0, %c0_1, %c0_2] : memref<4x4x128xf32, #tpu.memory_space<vmem>>, vector<4x4x128xf32>
    %c0_3 = arith.constant 0 : index
    %c0_4 = arith.constant 0 : index
    %4 = vector.load %arg13[%c0_3, %c0_4] : memref<4x4xf32, #tpu.memory_space<vmem>>, vector<4x4xf32>
    %cst = arith.constant dense<0.000000e+00> : vector<4x4xf32>
    %5 = vector.multi_reduction <add>, %3, %cst [2] : vector<4x4x128xf32> to vector<4x4xf32>
    %6 = arith.addf %4, %5 : vector<4x4xf32>
    %c0_5 = arith.constant 0 : index
    %c0_6 = arith.constant 0 : index
    %7 = vector.load %arg13[%c0_5, %c0_6] : memref<4x4xf32, #tpu.memory_space<vmem>>, vector<4x4xf32>
    tpu.vector_store %arg13[%c0_5, %c0_6], %6 {strides = array<i32>} : memref<4x4xf32, #tpu.memory_space<vmem>>, vector<4x4xf32>,
    %c0_7 = arith.constant 0 : index
    %c0_8 = arith.constant 0 : index
    %8 = vector.load %arg14[%c0_7, %c0_8] : memref<4x4xf32, #tpu.memory_space<vmem>>, vector<4x4xf32>
    %9 = arith.mulf %3, %3 : vector<4x4x128xf32>
    %cst_9 = arith.constant dense<0.000000e+00> : vector<4x4xf32>
    %10 = vector.multi_reduction <add>, %9, %cst_9 [2] : vector<4x4x128xf32> to vector<4x4xf32>
    %11 = arith.addf %8, %10 : vector<4x4xf32>
    %c0_10 = arith.constant 0 : index
    %c0_11 = arith.constant 0 : index
    %12 = vector.load %arg14[%c0_10, %c0_11] : memref<4x4xf32, #tpu.memory_space<vmem>>, vector<4x4xf32>
    tpu.vector_store %arg14[%c0_10, %c0_11], %11 {strides = array<i32>} : memref<4x4xf32, #tpu.memory_space<vmem>>, vector<4x4xf32>,
    %c1_i32 = arith.constant 1 : i32
    %13 = arith.cmpi eq, %arg1, %c1_i32 : i32
    %14 = arith.extui %13 : i1 to i32
    %c0_i32_12 = arith.constant 0 : i32
    %15 = arith.cmpi ne, %14, %c0_i32_12 : i32
    scf.if %15 {
      %c0_13 = arith.constant 0 : index
      %c0_14 = arith.constant 0 : index
      %16 = vector.load %arg13[%c0_13, %c0_14] : memref<4x4xf32, #tpu.memory_space<vmem>>, vector<4x4xf32>
      %c0_15 = arith.constant 0 : index
      %c0_16 = arith.constant 0 : index
      %17 = vector.load %arg14[%c0_15, %c0_16] : memref<4x4xf32, #tpu.memory_space<vmem>>, vector<4x4xf32>
      %c0_17 = arith.constant 0 : index
      %c0_18 = arith.constant 0 : index
      %18 = vector.load %arg3[%c0_17, %c0_18] : memref<4x1xf32, #tpu.memory_space<vmem>>, vector<4x1xf32>
      %19 = vector.shape_cast %18 : vector<4x1xf32> to vector<1x4x1xf32>
      %cst_19 = arith.constant dense<0.000000e+00> : vector<1xf32>
      %20 = vector.multi_reduction <add>, %19, %cst_19 [1, 2] : vector<1x4x1xf32> to vector<1xf32>
      %21 = vector.shape_cast %20 : vector<1xf32> to vector<1x1x1xf32>
      %22 = vector.extract %21[0, 0, 0] : f32 from vector<1x1x1xf32>
      %23 = vector.broadcast %22 : f32 to vector<1x1xf32>
      %cst_20 = arith.constant 2.560000e+02 : f32
      %24 = vector.broadcast %cst_20 : f32 to vector<1x1xf32>
      %25 = arith.mulf %23, %24 : vector<1x1xf32>
      %cst_21 = arith.constant 1.000000e+00 : f32
      %26 = vector.broadcast %cst_21 : f32 to vector<1x1xf32>
      %27 = arith.maximumf %25, %26 : vector<1x1xf32>
      %28 = vector.broadcast %18 : vector<4x1xf32> to vector<4x4xf32>
      %29 = arith.mulf %16, %28 : vector<4x4xf32>
      %cst_22 = arith.constant dense<0.000000e+00> : vector<4xf32>
      %30 = vector.multi_reduction <add>, %29, %cst_22 [0] : vector<4x4xf32> to vector<4xf32>
      %31 = vector.shape_cast %30 : vector<4xf32> to vector<1x4xf32>
      %32 = vector.broadcast %27 : vector<1x1xf32> to vector<1x4xf32>
      %33 = arith.divf %31, %32 : vector<1x4xf32>
      %34 = vector.broadcast %18 : vector<4x1xf32> to vector<4x4xf32>
      %35 = arith.mulf %17, %34 : vector<4x4xf32>
      %cst_23 = arith.constant dense<0.000000e+00> : vector<4xf32>
      %36 = vector.multi_reduction <add>, %35, %cst_23 [0] : vector<4x4xf32> to vector<4xf32>
      %37 = vector.shape_cast %36 : vector<4xf32> to vector<1x4xf32>
      %38 = vector.broadcast %27 : vector<1x1xf32> to vector<1x4xf32>
      %39 = arith.divf %37, %38 : vector<1x4xf32>
      %40 = arith.mulf %33, %33 : vector<1x4xf32>
      %41 = arith.subf %39, %40 : vector<1x4xf32>
      %cst_24 = arith.constant 0.000000e+00 : f32
      %42 = vector.broadcast %cst_24 : f32 to vector<1x4xf32>
      %43 = arith.maximumf %41, %42 : vector<1x4xf32>
      %cst_25 = arith.constant 9.99999974E-6 : f32
      %44 = vector.broadcast %cst_25 : f32 to vector<1x4xf32>
      %45 = arith.addf %43, %44 : vector<1x4xf32>
      %46 = math.rsqrt %45 : vector<1x4xf32>
      %c0_26 = arith.constant 0 : index
      %c0_27 = arith.constant 0 : index
      %47 = vector.load %arg5[%c0_26, %c0_27] : memref<1x4xf32, #tpu.memory_space<vmem>>, vector<1x4xf32>
      %48 = arith.mulf %46, %47 : vector<1x4xf32>
      %c0_28 = arith.constant 0 : index
      %c0_29 = arith.constant 0 : index
      %49 = vector.load %arg9[%c0_28, %c0_29] : memref<1x4xf32, #tpu.memory_space<vmem>>, vector<1x4xf32>
      tpu.vector_store %arg9[%c0_28, %c0_29], %48 {strides = array<i32>} : memref<1x4xf32, #tpu.memory_space<vmem>>, vector<1x4xf32>,
      %c0_30 = arith.constant 0 : index
      %c0_31 = arith.constant 0 : index
      %50 = vector.load %arg6[%c0_30, %c0_31] : memref<1x4xf32, #tpu.memory_space<vmem>>, vector<1x4xf32>
      %51 = arith.mulf %33, %48 : vector<1x4xf32>
      %52 = arith.subf %50, %51 : vector<1x4xf32>
      %c0_32 = arith.constant 0 : index
      %c0_33 = arith.constant 0 : index
      %53 = vector.load %arg10[%c0_32, %c0_33] : memref<1x4xf32, #tpu.memory_space<vmem>>, vector<1x4xf32>
      tpu.vector_store %arg10[%c0_32, %c0_33], %52 {strides = array<i32>} : memref<1x4xf32, #tpu.memory_space<vmem>>, vector<1x4xf32>,
      %c0_34 = arith.constant 0 : index
      %c0_35 = arith.constant 0 : index
      %54 = vector.load %arg4[%c0_34, %c0_35] : memref<4x1xf32, #tpu.memory_space<vmem>>, vector<4x1xf32>
      %55 = vector.shape_cast %54 : vector<4x1xf32> to vector<1x4x1xf32>
      %cst_36 = arith.constant dense<0.000000e+00> : vector<1xf32>
      %56 = vector.multi_reduction <add>, %55, %cst_36 [1, 2] : vector<1x4x1xf32> to vector<1xf32>
      %57 = vector.shape_cast %56 : vector<1xf32> to vector<1x1x1xf32>
      %58 = vector.extract %57[0, 0, 0] : f32 from vector<1x1x1xf32>
      %59 = vector.broadcast %58 : f32 to vector<1x1xf32>
      %cst_37 = arith.constant 2.560000e+02 : f32
      %60 = vector.broadcast %cst_37 : f32 to vector<1x1xf32>
      %61 = arith.mulf %59, %60 : vector<1x1xf32>
      %cst_38 = arith.constant 1.000000e+00 : f32
      %62 = vector.broadcast %cst_38 : f32 to vector<1x1xf32>
      %63 = arith.maximumf %61, %62 : vector<1x1xf32>
      %64 = vector.broadcast %54 : vector<4x1xf32> to vector<4x4xf32>
      %65 = arith.mulf %16, %64 : vector<4x4xf32>
      %cst_39 = arith.constant dense<0.000000e+00> : vector<4xf32>
      %66 = vector.multi_reduction <add>, %65, %cst_39 [0] : vector<4x4xf32> to vector<4xf32>
      %67 = vector.shape_cast %66 : vector<4xf32> to vector<1x4xf32>
      %68 = vector.broadcast %63 : vector<1x1xf32> to vector<1x4xf32>
      %69 = arith.divf %67, %68 : vector<1x4xf32>
      %70 = vector.broadcast %54 : vector<4x1xf32> to vector<4x4xf32>
      %71 = arith.mulf %17, %70 : vector<4x4xf32>
      %cst_40 = arith.constant dense<0.000000e+00> : vector<4xf32>
      %72 = vector.multi_reduction <add>, %71, %cst_40 [0] : vector<4x4xf32> to vector<4xf32>
      %73 = vector.shape_cast %72 : vector<4xf32> to vector<1x4xf32>
      %74 = vector.broadcast %63 : vector<1x1xf32> to vector<1x4xf32>
      %75 = arith.divf %73, %74 : vector<1x4xf32>
      %76 = arith.mulf %69, %69 : vector<1x4xf32>
      %77 = arith.subf %75, %76 : vector<1x4xf32>
      %cst_41 = arith.constant 0.000000e+00 : f32
      %78 = vector.broadcast %cst_41 : f32 to vector<1x4xf32>
      %79 = arith.maximumf %77, %78 : vector<1x4xf32>
      %cst_42 = arith.constant 9.99999974E-6 : f32
      %80 = vector.broadcast %cst_42 : f32 to vector<1x4xf32>
      %81 = arith.addf %79, %80 : vector<1x4xf32>
      %82 = math.rsqrt %81 : vector<1x4xf32>
      %c0_43 = arith.constant 0 : index
      %c0_44 = arith.constant 0 : index
      %83 = vector.load %arg7[%c0_43, %c0_44] : memref<1x4xf32, #tpu.memory_space<vmem>>, vector<1x4xf32>
      %84 = arith.mulf %82, %83 : vector<1x4xf32>
      %c0_45 = arith.constant 0 : index
      %c0_46 = arith.constant 0 : index
      %85 = vector.load %arg11[%c0_45, %c0_46] : memref<1x4xf32, #tpu.memory_space<vmem>>, vector<1x4xf32>
      tpu.vector_store %arg11[%c0_45, %c0_46], %84 {strides = array<i32>} : memref<1x4xf32, #tpu.memory_space<vmem>>, vector<1x4xf32>,
      %c0_47 = arith.constant 0 : index
      %c0_48 = arith.constant 0 : index
      %86 = vector.load %arg8[%c0_47, %c0_48] : memref<1x4xf32, #tpu.memory_space<vmem>>, vector<1x4xf32>
      %87 = arith.mulf %69, %84 : vector<1x4xf32>
      %88 = arith.subf %86, %87 : vector<1x4xf32>
      %c0_49 = arith.constant 0 : index
      %c0_50 = arith.constant 0 : index
      %89 = vector.load %arg12[%c0_49, %c0_50] : memref<1x4xf32, #tpu.memory_space<vmem>>, vector<1x4xf32>
      tpu.vector_store %arg12[%c0_49, %c0_50], %88 {strides = array<i32>} : memref<1x4xf32, #tpu.memory_space<vmem>>, vector<1x4xf32>,
    } else {
    }
    return
  }
  func.func @transform_0(%arg0: i32, %arg1: i32) -> (i32, i32, i32) {
    %c0_i32 = arith.constant 0 : i32
    %c0_i32_0 = arith.constant 0 : i32
    return %c0_i32, %arg0, %arg1 : i32, i32, i32
  }
  func.func @transform_1(%arg0: i32, %arg1: i32) -> (i32, i32) {
    %c0_i32 = arith.constant 0 : i32
    %c0_i32_0 = arith.constant 0 : i32
    %c0_i32_1 = arith.constant 0 : i32
    return %c0_i32, %c0_i32_0 : i32, i32
  }
  func.func @transform_2(%arg0: i32, %arg1: i32) -> (i32, i32) {
    %c0_i32 = arith.constant 0 : i32
    %c0_i32_0 = arith.constant 0 : i32
    %c0_i32_1 = arith.constant 0 : i32
    return %c0_i32, %c0_i32_0 : i32, i32
  }
  func.func @transform_3(%arg0: i32, %arg1: i32) -> (i32, i32) {
    %c0_i32 = arith.constant 0 : i32
    %c0_i32_0 = arith.constant 0 : i32
    return %c0_i32, %arg0 : i32, i32
  }
  func.func @transform_4(%arg0: i32, %arg1: i32) -> (i32, i32) {
    %c0_i32 = arith.constant 0 : i32
    %c0_i32_0 = arith.constant 0 : i32
    return %c0_i32, %arg0 : i32, i32
  }
  func.func @transform_5(%arg0: i32, %arg1: i32) -> (i32, i32) {
    %c0_i32 = arith.constant 0 : i32
    %c0_i32_0 = arith.constant 0 : i32
    return %c0_i32, %arg0 : i32, i32
  }
  func.func @transform_6(%arg0: i32, %arg1: i32) -> (i32, i32) {
    %c0_i32 = arith.constant 0 : i32
    %c0_i32_0 = arith.constant 0 : i32
    return %c0_i32, %arg0 : i32, i32
  }
  func.func @transform_7(%arg0: i32, %arg1: i32) -> (i32, i32) {
    %c0_i32 = arith.constant 0 : i32
    %c0_i32_0 = arith.constant 0 : i32
    return %c0_i32, %arg0 : i32, i32
  }
  func.func @transform_8(%arg0: i32, %arg1: i32) -> (i32, i32) {
    %c0_i32 = arith.constant 0 : i32
    %c0_i32_0 = arith.constant 0 : i32
    return %c0_i32, %arg0 : i32, i32
  }
  func.func @transform_9(%arg0: i32, %arg1: i32) -> (i32, i32) {
    %c0_i32 = arith.constant 0 : i32
    %c0_i32_0 = arith.constant 0 : i32
    return %c0_i32, %arg0 : i32, i32
  }
  func.func @transform_10(%arg0: i32, %arg1: i32) -> (i32, i32) {
    %c0_i32 = arith.constant 0 : i32
    %c0_i32_0 = arith.constant 0 : i32
    return %c0_i32, %arg0 : i32, i32
  }
}

</mosaic_0001>

<bundles_post_ra>
// kernel: tpu_custom_call.1
= control target key start
LH: loop header
LB: loop body
LE: loop exit
PB: predicated region body
PF: predicated region fallthrough
CT: control target
= control target key end

     0   :  { %16 = vsyncpa [#allocation5], 0  ;;  %s1434_s0 = inlined_call_operand.hbm [shape: f32[4,4,256], index: 0, kind: input, shape index: {}]   ;;  %s1435_s1 = inlined_call_operand.vmem [shape: f32[4,1], index: 1, kind: input, shape index: {}]   ;;  %s1436_s2 = inlined_call_operand.vmem [shape: f32[4,1], index: 2, kind: input, shape index: {}]   ;;  %s1437_s3 = inlined_call_operand.vmem [shape: f32[1,4], index: 3, kind: input, shape index: {}]   ;;  %s1438_s4 = inlined_call_operand.vmem [shape: f32[1,4], index: 4, kind: input, shape index: {}]   ;;  %s1439_s5 = inlined_call_operand.vmem [shape: f32[1,4], index: 5, kind: input, shape index: {}]   ;;  %s1440_s6 = inlined_call_operand.vmem [shape: f32[1,4], index: 6, kind: input, shape index: {}]   ;;  %s1441_s7 = inlined_call_operand.hbm [shape: f32[1,4], index: 7, kind: output, shape index: {0}]   ;;  %s1442_s8 = inlined_call_operand.hbm [shape: f32[1,4], index: 8, kind: output, shape index: {1}]   ;;  %s1443_s9 = inlined_call_operand.hbm [shape: f32[1,4], index: 9, kind: output, shape index: {2}]   ;;  %s1444_s10 = inlined_call_operand.hbm [shape: f32[1,4], index: 10, kind: output, shape index: {3}]  }
   0x1   :  { %18 = vsyncpa [#allocation5 + $0x1], 0 }
   0x2   :  { %19 = vsyncpa [#allocation6], 0 }
   0x3   :  { %20 = vsyncpa [#allocation9], 0 }
   0x4   :  { %21 = vsyncpa [#allocation12], 0  ;;  %s1273_s13 = smov 0   ;;  %s1275_s14 = smov 0  }
   0x5   :  { %s1277_s15 = smov 0   ;;  %s1279_s16 = smov 0  }
   0x6   :  { %s1281_s17 = smov 0   ;;  %s1283_s18 = smov 0  }
   0x7 LB: > { %s1446_s19 = sadd.s32 4294967295, %s1207_s18   ;;  %s36_s20 = sadd.s32 1, %s1203_s17  ;;  %s1207_s18 = sphi %s1283_s18, %s27_s18   ;;  %s1203_s17 = sphi %s1281_s17, %s1459_s17   ;;  %s1199_s16 = sphi %s1279_s16, %s1458_s16   ;;  %s1195_s15 = sphi %s1277_s15, %s1457_s15   ;;  %s1191_s14 = sphi %s1275_s14, %s1456_s14   ;;  %s1187_s13 = sphi %s1273_s13, %s1455_s13  }
   0x8   : > { %p37_p0 = scmp.ge.s32.totalorder %s36_s20, 2  ;;  %s48_s21 = sadd.s32 1, %s1195_s15 }
   0x9   : > { %p55_p1 = scmp.ne.s32.totalorder %s1195_s15, %s1191_s14  ;;  %p56_p2 = scmp.eq.s32.totalorder %s1207_s18, 0 }
   0xa   : > { %s1461_s20 = smov (%p37_p0, %s36_s20), 0  ;;  %p61_p4 = scmp.ne.s32.totalorder %s1191_s14, %s1187_s13 }
   0xb   : > { %1447 = sst [smem:[#allocation17_spill]] %s1461_s20  ;;  %p1309_p3 = por %p56_p2, %p55_p1 }
   0xc   : > { %s44_s23 = ssub.s32 %s1203_s17, %s1461_s20  ;;  %p62_p5 = scmp.eq.s32.totalorder %s1446_s19, 0 }
   0xd   : > { %p46_p6 = scmp.eq.s32.totalorder %s44_s23, 0  ;;  %p927_p8 = scmp.lt.s32.totalorder %s1207_s18, 2 }
   0xe   : > { %p1318_p7 = por %p62_p5, %p61_p4  ;;  %s365_s26 = sand.u32 1, %s1195_s15  }
   0xf   : > { %s1324_s25 = scalar_select %p46_p6, %s1195_s15, %s48_s21  }
  0x10   : > { %s886_s27 = sshll.u32 %s1203_s17, 2  ;;  %s885_s28 = sshll.u32 %s365_s26, 4 }
  0x11   : > { %1450 = sst [smem:[#allocation18_spill]] %s1324_s25  ;;  %s375_s11 = scalar_lea.hbm %s1434_s0, %s886_s27 }
  0x12   : > { %s376_s12 = sshll.u32 %s375_s11, 4  ;;  %s369_s13 = scalar_lea.vmem [#allocation4], %s885_s28  ;;  %s377_s12 = int_to_ptr.hbm [resolvable:$true] %s376_s12 }
  0x13   : > { %s378_s20 = sshll.u32 %s369_s13, 4  ;;  %p924_p9 = pnand %p927_p8, %p1309_p3  ;;  %s379_s20 = int_to_ptr.vmem [resolvable:$true] %s378_s20 }
  0x14   : > { %p887_p10 = scmp.ge.s32.totalorder %s1207_s18, 1  ;;  %s366_s23 = scalar_lea.sflag [#allocation5], %s365_s26 }
  0x15   : > { %s1209_s19 = smov 128   ;;  %s1210_s21 = smov 64  }
  0x16   : > { %s1211_s25 = smov 4   ;;  %p386_p11 = scmp.lt.s32.totalorder %s1207_s18, 3 }
  0x17   : > { %926 = dma.hbm_to_vmem [thread:$0]  (!%p924_p9), %s377_s12, 256, %s379_s20, %s366_s23, %s1209_s19, %s1210_s21, %s1211_s25  }
  0x18   : > { %p387_p12 = pnand %p887_p10, %p386_p11 }
  0x19   : > { %s392_s29 = sand.u32 (!%p387_p12), 1, %s1191_s14  }
  0x1a   : > { %390 = sbr.rel (%p387_p12) target bundleno = 446 (0x1be), region = 48  ;;  %s888_s27 = sshll.u32 (!%p387_p12), %s392_s29, 4 }
  0x1b   : > { %s393_s30 = scalar_lea.sflag (!%p387_p12), [#allocation5], %s392_s29  ;;  %s396_s28 = scalar_lea.vmem (!%p387_p12), [#allocation4], %s888_s27 }
  0x1f   : > { %1170 = dma.done.wait (%p1318_p7), %s393_s30, 256  }
  0x20   : > { %1172 = vsyncadd (%p1318_p7), %s393_s30, 4294967040  ;;  %p889_p13 = scmp.ne.s32.totalorder %s1199_s16, 0 }
  0x22   : > { %456 = sbr.rel (%p889_p13) target bundleno = 42 (0x2a), region = 56 }
  0x27   : > { %vm457_vm0 = vcmask 27648   ;;  %v1212_v0 = vmov 0.0  }
  0x28   : > { %458 = vst.msk [vmem:[#allocation2] sm:$0xf] %vm457_vm0, %v1212_v0 }
  0x29   : > { %459 = vst.msk [vmem:[#allocation3] sm:$0xf] %vm457_vm0, %v1212_v0 }
  0x2a PF: > { %v460_v1 = vld [vmem:[%s396_s28] sm:$0xf]  ;;  %vm465_vm1 = vcmask 1043456   ;;  %v462_v2 = vld [vmem:[%s396_s28 + $0x8] sm:$0xf]  ;;  %v482_v20 = vlaneseq  ;;  %vm488_vm2 = vcmask 1041409  }
  0x2b   : > { %v466_v3 = vsel %vm465_vm1, %v460_v1, 0.0  ;;  %v499_v4 = vmul.f32 %v460_v1, %v460_v1  ;;  %v472_v5 = vsel %vm465_vm1, %v462_v2, 0.0  ;;  %v461_v6 = vld [vmem:[%s396_s28 + $0x4] sm:$0xf]  ;;  %v501_v8 = vmul.f32 %v462_v2, %v462_v2  ;;  %v463_v13 = vld [vmem:[%s396_s28 + $0xc] sm:$0xf] }
  0x2c   : > { %467 = vadd.xlane.f32.xlu0 %v466_v3  ;;  %473 = vadd.xlane.f32.xlu2 %v472_v5  ;;  %v500_v9 = vmul.f32 %v461_v6, %v461_v6  ;;  %v469_v10 = vsel %vm465_vm1, %v461_v6, 0.0  ;;  %v502_v14 = vmul.f32 %v463_v13, %v463_v13  ;;  %v475_v15 = vsel %vm465_vm1, %v463_v13, 0.0  ;;  %p890_p0 = scmp.ne.s32.totalorder %s1199_s16, 1 }
  0x2d   : > { %v503_v7 = vsel %vm465_vm1, %v499_v4, 0.0  ;;  %v509_v11 = vsel %vm465_vm1, %v501_v8, 0.0  ;;  %v483_v22 = vand.u32 127, %v482_v20  ;;  %vm490_vm3 = vcmask 1042434  }
  0x2e   : > { %504 = vadd.xlane.f32.xlu1 %v503_v7  ;;  %v506_v12 = vsel %vm465_vm1, %v500_v9, 0.0  ;;  %v512_v16 = vsel %vm465_vm1, %v502_v14, 0.0  ;;  %vm492_vm4 = vcmask 1043459   ;;  %vm496_vm5 = vcmask 27648  }
  0x2f   : > { %v464_v34 = vld [vmem:[#allocation2] sm:$0xf] }
  0x30   : > { %v498_v39 = vld [vmem:[#allocation3] sm:$0xf] }
  0x34   : > { %470 = vadd.xlane.f32.xlu0 %v469_v10  ;;  %510 = vadd.xlane.f32.xlu2 %v509_v11 }
  0x36   : > { %507 = vadd.xlane.f32.xlu1 %v506_v12 }
  0x3c   : > { %476 = vadd.xlane.f32.xlu0 %v475_v15 }
  0x3e   : > { %513 = vadd.xlane.f32.xlu1 %v512_v16 }
  0x9f   : > { %v468_v17 = vpop.xlane.xlu0 %467  ;;  %v474_v19 = vpop.xlane.xlu2 %473 }
  0xa0   : > { %v484_v25 = vperm.slane %v468_v17, %v483_v22  ;;  %v486_v28 = vperm.slane %v474_v19, %v483_v22 }
  0xa1   : > { %v505_v18 = vpop.xlane.xlu1 %504 }
  0xa2   : > { %v519_v29 = vperm.slane %v505_v18, %v483_v22 }
  0xa7   : > { %v471_v21 = vpop.xlane.xlu0 %470  ;;  %v511_v27 = vpop.xlane.xlu2 %510 }
  0xa8   : > { %v485_v24 = vperm.slane %v471_v21, %v483_v22  ;;  %v521_v31 = vperm.slane %v511_v27, %v483_v22 }
  0xa9   : > { %v508_v23 = vpop.xlane.xlu1 %507 }
  0xaa   : > { %v520_v26 = vperm.slane %v508_v23, %v483_v22  ;;  %v489_v30 = vsel %vm488_vm2, %v485_v24, %v484_v25 }
  0xab   : > { %v491_v36 = vsel %vm490_vm3, %v486_v28, %v489_v30 }
  0xac   : > { %v523_v33 = vsel %vm488_vm2, %v520_v26, %v519_v29 }
  0xad   : > { %v524_v41 = vsel %vm490_vm3, %v521_v31, %v523_v33 }
  0xaf   : > { %v477_v32 = vpop.xlane.xlu0 %476 }
  0xb0   : > { %v487_v35 = vperm.slane %v477_v32, %v483_v22 }
  0xb1   : > { %v514_v37 = vpop.xlane.xlu1 %513 }
  0xb2   : > { %v493_v38 = vsel %vm492_vm4, %v487_v35, %v491_v36  ;;  %v522_v40 = vperm.slane %v514_v37, %v483_v22 }
  0xb3   : > { %v495_v42 = vadd.f32 %v493_v38, %v464_v34  ;;  %532 = sbr.rel (%p890_p0) target bundleno = 429 (0x1ad), region = 60 }
  0xb4   : > { %v525_v43 = vsel %vm492_vm4, %v522_v40, %v524_v41 }
  0xb5   : > { %497 = vst.msk [vmem:[#allocation2] sm:$0xf] %vm496_vm5, %v495_v42  ;;  %v527_v44 = vadd.f32 %v525_v43, %v498_v39 }
  0xb7   : > { %528 = vst.msk [vmem:[#allocation3] sm:$0xf] %vm496_vm5, %v527_v44 }
  0xb8   : > { %v535_v45 = vld [vmem:[%s1435_s1] sm:$0xf]  ;;  %vm536_vm6 = vcmask 3072   ;;  %v1213_v47 = vmov 0   ;;  %vm603_vm2 = vcmask 24576  }
  0xb9   : > { %v537_v46 = vsel %vm536_vm6, %v535_v45, 0.0  ;;  %993 = vset.pattern.permute.xlu1 %v1213_v47  ;;  %994 = vset.pattern.permute.xlu0 %v1213_v47  ;;  %v609_v48 = vld [vmem:[%s1436_s2] sm:$0xf] }
  0xba   : > { %538 = vadd.xlane.f32.xlu0 %v537_v46  ;;  %552 = vperm.xlu1 %993, %v535_v45   ;;  %v610_v49 = vsel %vm536_vm6, %v609_v48, 0.0 }
  0xbc   : > { %v533_v1 = vld [vmem:[#allocation2] sm:$0xf] }
  0xbe   : > { %v534_v2 = vld [vmem:[#allocation3] sm:$0xf] }
  0xc2   : > { %611 = vadd.xlane.f32.xlu0 %v610_v49  ;;  %625 = vperm.xlu1 %993, %v609_v48  }
 0x12c   : > { %v553_v0 = vpop.permute.xlu1 %552 }
 0x12d   : > { %v539_v50 = vpop.xlane.xlu0 %538  ;;  %v555_v3 = vmul.f32 %v553_v0, %v533_v1  ;;  %v578_v4 = vmul.f32 %v553_v0, %v534_v2 }
 0x12e   : > { %v540_v51 = vrot.slane %v539_v50, 4 }
 0x12f   : > { %v556_v6 = vsel %vm496_vm5, %v555_v3, 0.0  ;;  %v579_v7 = vsel %vm496_vm5, %v578_v4, 0.0 }
 0x130   : > { %v541_v52 = vadd.f32 %v540_v51, %v539_v50  ;;  %v557_v9 = vrot.slane %v556_v6, 4  ;;  %v580_v12 = vrot.slane %v579_v7, 4 }
 0x132   : > { %v542_v53 = vrot.slane %v541_v52, 2  ;;  %v558_v15 = vadd.f32 %v557_v9, %v556_v6  ;;  %v581_v17 = vadd.f32 %v580_v12, %v579_v7 }
 0x134   : > { %v543_v54 = vadd.f32 %v542_v53, %v541_v52  ;;  %v626_v5 = vpop.permute.xlu1 %625  ;;  %v559_v20 = vrot.slane %v558_v15, 2  ;;  %v582_v23 = vrot.slane %v581_v17, 2 }
 0x135   : > { %v612_v55 = vpop.xlane.xlu0 %611  ;;  %v628_v10 = vmul.f32 %v626_v5, %v533_v1  ;;  %v651_v14 = vmul.f32 %v626_v5, %v534_v2 }
 0x136   : > { %v613_v56 = vrot.slane %v612_v55, 4  ;;  %v544_v57 = vrot.slane %v543_v54, 1  ;;  %v560_v29 = vadd.f32 %v559_v20, %v558_v15  ;;  %v583_v31 = vadd.f32 %v582_v23, %v581_v17 }
 0x137   : > { %v629_v16 = vsel %vm496_vm5, %v628_v10, 0.0  ;;  %v652_v19 = vsel %vm496_vm5, %v651_v14, 0.0 }
 0x138   : > { %v614_v58 = vadd.f32 %v613_v56, %v612_v55  ;;  %v545_v59 = vadd.f32 %v544_v57, %v543_v54  ;;  %v630_v18 = vrot.slane %v629_v16, 4  ;;  %v653_v24 = vrot.slane %v652_v19, 4 }
 0x139   : > { %v561_v36 = vrot.slane %v560_v29, 1  ;;  %v584_v39 = vrot.slane %v583_v31, 1 }
 0x13a   : > { %v615_v60 = vrot.slane %v614_v58, 2  ;;  %901 = vpush %v545_v59  ;;  %v631_v26 = vadd.f32 %v630_v18, %v629_v16  ;;  %v654_v32 = vadd.f32 %v653_v24, %v652_v19  ;;  %v601_v16 = vld [vmem:[%s1437_s3] sm:$0x1] }
 0x13b   : > { %v562_v44 = vadd.f32 %v561_v36, %v560_v29  ;;  %v585_v49 = vadd.f32 %v584_v39, %v583_v31  ;;  %v677_v31 = vld [vmem:[%s1440_s6] sm:$0x1] }
 0x13c   : > { %v616_v61 = vadd.f32 %v615_v60, %v614_v58  ;;  %v632_v34 = vrot.slane %v631_v26, 2  ;;  %v655_v40 = vrot.slane %v654_v32, 2 }
 0x13e   : > { %v617_v62 = vrot.slane %v616_v61, 1  ;;  %v633_v43 = vadd.f32 %v632_v34, %v631_v26  ;;  %v656_v50 = vadd.f32 %v655_v40, %v654_v32 }
 0x140   : > { %v618_v63 = vadd.f32 %v617_v62, %v616_v61  ;;  %v634_v52 = vrot.slane %v633_v43, 1  ;;  %v657_v59 = vrot.slane %v656_v50, 1 }
 0x142   : > { %903 = vpush %v618_v63  ;;  %v635_v63 = vadd.f32 %v634_v52, %v633_v43  ;;  %v658_v3 = vadd.f32 %v657_v59, %v656_v50 }
 0x16b   : > { %s902_s16 = spop %901 }
 0x16c   : > { %v547_v8 = vstv %s902_s16 }
 0x16d   : > { %v548_v11 = vmul.f32 256.0, %v547_v8 }
 0x16f   : > { %v549_v13 = vmax.f32 %v548_v11, 1.0 }
 0x171   : > { %995 = vrcp.f32 %v549_v13  ;;  %v574_v33 = vand.u32 2147483648, %v549_v13  ;;  %v572_v37 = vand.u32 2147483647, %v549_v13  ;;  %vm568_vm8 = vweird.f32 %v549_v13 }
 0x173   : > { %s904_s25 = spop %903  ;;  %v575_v42 = vor.u32 1.1754944e-38, %v574_v33  ;;  %vm573_vm10 = vcmp.eq.f32.partialorder %v572_v37, 8.507059e+37 }
 0x174   : > { %v620_v21 = vstv %s904_s25 }
 0x175   : > { %v621_v22 = vmul.f32 256.0, %v620_v21 }
 0x177   : > { %v996_v25 = vpop.eup %995  ;;  %v622_v27 = vmax.f32 %v621_v22, 1.0  ;;  %v605_v22 = vld [vmem:[%s1438_s4] sm:$0x1] }
 0x178   : > { %v564_v28 = vmul.f32 %v996_v25, %v549_v13  ;;  %vm569_vm7 = vweird.f32 %v996_v25 }
 0x179   : > { %997 = vrcp.f32 %v622_v27  ;;  %vm570_vm9 = vmor %vm568_vm8, %vm569_vm7  ;;  %v645_v53 = vand.u32 2147483647, %v622_v27  ;;  %v647_v54 = vand.u32 2147483648, %v622_v27  ;;  %vm641_vm12 = vweird.f32 %v622_v27 }
 0x17a   : > { %v565_v30 = vsub.f32 1.0, %v564_v28  ;;  %v674_v28 = vld [vmem:[%s1439_s5] sm:$0x1] }
 0x17b   : > { %v648_v61 = vor.u32 1.1754944e-38, %v647_v54  ;;  %vm646_vm14 = vcmp.eq.f32.partialorder %v645_v53, 8.507059e+37 }
 0x17c   : > { %v566_v35 = vmul.f32 %v996_v25, %v565_v30 }
 0x17e   : > { %v567_v38 = vadd.f32 %v996_v25, %v566_v35 }
 0x17f   : > { %v998_v41 = vpop.eup %997 }
 0x180   : > { %v571_v45 = vsel %vm570_vm9, %v996_v25, %v567_v38  ;;  %v637_v46 = vmul.f32 %v998_v41, %v622_v27  ;;  %vm642_vm11 = vweird.f32 %v998_v41 }
 0x181   : > { %v576_v47 = vsel %vm573_vm10, %v575_v42, %v571_v45  ;;  %vm643_vm13 = vmor %vm641_vm12, %vm642_vm11 }
 0x182   : > { %v577_v48 = vmul.f32 %v576_v47, %v562_v44  ;;  %v638_v51 = vsub.f32 1.0, %v637_v46  ;;  %v586_v55 = vmul.f32 %v585_v49, %v576_v47 }
 0x184   : > { %v587_v56 = vmul.f32 %v577_v48, %v577_v48  ;;  %v639_v57 = vmul.f32 %v998_v41, %v638_v51 }
 0x186   : > { %v588_v58 = vsub.f32 %v586_v55, %v587_v56  ;;  %v640_v60 = vadd.f32 %v998_v41, %v639_v57 }
 0x188   : > { %v589_v62 = vmax.f32 %v588_v58, 0.0  ;;  %v644_v0 = vsel %vm643_vm13, %v998_v41, %v640_v60 }
 0x189   : > { %v649_v1 = vsel %vm646_vm14, %v648_v61, %v644_v0 }
 0x18a   : > { %v590_v2 = vadd.f32 1e-05, %v589_v62  ;;  %v650_v4 = vmul.f32 %v649_v1, %v635_v63  ;;  %v659_v5 = vmul.f32 %v658_v3, %v649_v1 }
 0x18c   : > { %999 = vrsqrt.f32 %v590_v2  ;;  %v660_v6 = vmul.f32 %v650_v4, %v650_v4  ;;  %vm597_vm0 = vweird.f32 %v590_v2 }
 0x18e   : > { %v661_v7 = vsub.f32 %v659_v5, %v660_v6 }
 0x190   : > { %v662_v8 = vmax.f32 %v661_v7, 0.0 }
 0x192   : > { %v1000_v9 = vpop.eup %999  ;;  %v663_v10 = vadd.f32 1e-05, %v662_v8 }
 0x193   : > { %v592_v11 = vmul.f32 %v1000_v9, %v590_v2  ;;  %vm598_vm15 = vweird.f32 %v1000_v9 }
 0x194   : > { %1001 = vrsqrt.f32 %v663_v10  ;;  %vm599_vm1 = vmor %vm597_vm0, %vm598_vm15  ;;  %vm670_vm4 = vweird.f32 %v663_v10 }
 0x195   : > { %v593_v12 = vmul.f32 %v1000_v9, %v592_v11 }
 0x197   : > { %v594_v13 = vmul.f32 0.5, %v593_v12 }
 0x199   : > { %v595_v14 = vsub.f32 1.5, %v594_v13 }
 0x19a   : > { %v1002_v15 = vpop.eup %1001 }
 0x19b   : > { %v596_v17 = vmul.f32 %v1000_v9, %v595_v14  ;;  %v665_v18 = vmul.f32 %v1002_v15, %v663_v10  ;;  %vm671_vm3 = vweird.f32 %v1002_v15 }
 0x19c   : > { %vm672_vm5 = vmor %vm670_vm4, %vm671_vm3 }
 0x19d   : > { %v600_v19 = vsel %vm599_vm1, %v1000_v9, %v596_v17  ;;  %v666_v20 = vmul.f32 %v1002_v15, %v665_v18 }
 0x19e   : > { %v602_v21 = vmul.f32 %v601_v16, %v600_v19 }
 0x19f   : > { %v667_v23 = vmul.f32 0.5, %v666_v20 }
 0x1a0   : > { %604 = vst.msk [vmem:[#allocation7] sm:$0x1] %vm603_vm2, %v602_v21  ;;  %v606_v24 = vmul.f32 %v602_v21, %v577_v48 }
 0x1a1   : > { %v668_v25 = vsub.f32 1.5, %v667_v23 }
 0x1a2   : > { %v607_v26 = vsub.f32 %v605_v22, %v606_v24 }
 0x1a3   : > { %v669_v27 = vmul.f32 %v1002_v15, %v668_v25 }
 0x1a4   : > { %608 = vst.msk [vmem:[#allocation8] sm:$0x1] %vm603_vm2, %v607_v26 }
 0x1a5   : > { %v673_v29 = vsel %vm672_vm5, %v1002_v15, %v669_v27 }
 0x1a6   : > { %v675_v30 = vmul.f32 %v674_v28, %v673_v29 }
 0x1a8   : > { %676 = vst.msk [vmem:[#allocation10] sm:$0x1] %vm603_vm2, %v675_v30  ;;  %v678_v32 = vmul.f32 %v675_v30, %v650_v4 }
 0x1aa   : > { %v679_v33 = vsub.f32 %v677_v31, %v678_v32 }
 0x1ac   : > { %680 = vst.msk [vmem:[#allocation11] sm:$0x1] %vm603_vm2, %v679_v33 }
 0x1ad PF: > { %s1451_s30 = sadd.s32 4294967295, %s1207_s18   ;;  %s1214_s19 = smov [#allocation8]  }
 0x1ae   : > { %p1380_p1 = scmp.eq.s32.totalorder %s1451_s30, 1  ;;  %s701_s20 = sshll.u32 %s1214_s19, 4  ;;  %s702_s20 = int_to_ptr.vmem [resolvable:$true] %s701_s20 }
 0x1af   : > { %s703_s16 = sshll.u32 %s1442_s8, 4  ;;  %s1215_s25 = smov [#allocation7]   ;;  %s704_s16 = int_to_ptr.hbm [resolvable:$true] %s703_s16 }
 0x1b0   : > { %910 = dma.vmem_to_hbm [thread:$0]  (%p1380_p1), %s702_s20, 16, %s704_s16, [#allocation9]  }
 0x1b1   : > { %s688_s26 = sshll.u32 %s1215_s25, 4  ;;  %s690_s13 = sshll.u32 %s1441_s7, 4  ;;  %s689_s26 = int_to_ptr.vmem [resolvable:$true] %s688_s26  ;;  %s691_s13 = int_to_ptr.hbm [resolvable:$true] %s690_s13 }
 0x1b2   : > { %908 = dma.vmem_to_hbm [thread:$0]  (%p1380_p1), %s689_s26, 16, %s691_s13, [#allocation6]  }
 0x1b3   : > { %s716_s29 = sshll.u32 %s1443_s9, 4  ;;  %s1216_s27 = smov [#allocation10]   ;;  %s717_s29 = int_to_ptr.hbm [resolvable:$true] %s716_s29 }
 0x1b4   : > { %s714_s30 = sshll.u32 %s1216_s27, 4  ;;  %s1217_s19 = smov [#allocation11]   ;;  %s715_s30 = int_to_ptr.vmem [resolvable:$true] %s714_s30 }
 0x1b5   : > { %912 = dma.vmem_to_hbm [thread:$0]  (%p1380_p1), %s715_s30, 16, %s717_s29, [#allocation9]  }
 0x1b6   : > { %s727_s20 = sshll.u32 %s1217_s19, 4  ;;  %s729_s16 = sshll.u32 %s1444_s10, 4  ;;  %s728_s20 = int_to_ptr.vmem [resolvable:$true] %s727_s20  ;;  %s730_s16 = int_to_ptr.hbm [resolvable:$true] %s729_s16 }
 0x1b7   : > { %914 = dma.vmem_to_hbm [thread:$0]  (%p1380_p1), %s728_s20, 16, %s730_s16, [#allocation12]  }
 0x1b8   : > { %1174 = dma.done.wait (%p1380_p1), [#allocation6], 16  }
 0x1b9   : > { %1176 = vsyncadd (%p1380_p1), [#allocation6], 4294967280 }
 0x1ba   : > { %1178 = dma.done.wait (%p1380_p1), [#allocation9], 32  }
 0x1bb   : > { %1180 = vsyncadd (%p1380_p1), [#allocation9], 4294967264 }
 0x1bc   : > { %1182 = dma.done.wait (%p1380_p1), [#allocation12], 16  }
 0x1bd   : > { %1184 = vsyncadd (%p1380_p1), [#allocation12], 4294967280 }
 0x1be PF: > { %s27_s18 = sadd.s32 1, %s1207_s18   ;;  %s1453_s25 = sld [smem:[#allocation18_spill]] }
 0x1bf   : > { %p24_p2 = scmp.ge.s32.totalorder %s27_s18, 4   ;;  %s1454_s26 = sld [smem:[#allocation17_spill]] }
 0x1c0   : > { %s1455_s13 = smov %s1191_s14  ;;  %s1456_s14 = smov %s1195_s15 }
 0x1c1   : > { %s1458_s16 = smov %s1203_s17  ;;  %26 = sbr.rel (!%p24_p2) target bundleno = 7 (0x7), region = 133 }
 0x1c4   : > { %s1457_s15 = smov %s1453_s25 }
 0x1c5   : > { %s1459_s17 = smov %s1454_s26 }
 0x1c6   :  { %758 = vsyncpa [#allocation5], 1 }
 0x1c7   :  { %760 = vsyncpa [#allocation5 + $0x1], 1 }
 0x1c8   :  { %761 = vsyncpa [#allocation6], 1 }
 0x1c9   :  { %763 = vsyncpa [#allocation6 + $0x1], 1 }
 0x1ca   :  { %764 = vsyncpa [#allocation9], 1 }
 0x1cb   :  { %765 = vsyncpa [#allocation12], 1 }

</bundles_post_ra>
